<compile_context>
chip_gen: v5e
topology: v5e:2x2
jax: 0.10.0
libtpu: 0.0.40
codegen_flags: <defaults>
</compile_context>

<pallas_src>
import jax
import jax.numpy as jnp
from jax import lax
from jax.experimental import pallas as pl
from jax.experimental.pallas import tpu as pltpu


_LANE = 128
_SUBLANE = 8
# Per-TensorCore VMEM budget for pipeline buffers.  v7x has 64 MiB/TC (the
# binding constraint); v5e/v6e have 128 MiB.  44 MiB leaves headroom for
# Mosaic internal scratch on all three generations.
_VMEM_BUDGET_BYTES = 44 << 20


def _round_up(n, m):
    return -(-n // m) * m


def _tile_vmem_bytes(tm, d, o, x_isz, w_isz, o_isz):
    """VMEM footprint of one grid step (lane/sublane padded), double-buffered."""
    d_lanes = _round_up(d, _LANE)                 # D=18 lane-pads to 128 in VMEM
    x_buf = _round_up(tm, _SUBLANE) * d_lanes * x_isz
    o_buf = _round_up(o, _SUBLANE) * _round_up(tm, _LANE) * o_isz
    w_buf = _round_up(o, _SUBLANE) * d_lanes * w_isz
    b_buf = _round_up(o, _SUBLANE) * _LANE * 4
    return 2 * (x_buf + o_buf + w_buf + b_buf)    # x2: double buffering


def _max_rows_for_budget(budget, d, o, x_isz, o_isz):
    """Largest row tile whose double-buffered, lane-padded cost fits `budget`."""
    per_row = 2 * (_round_up(d, _LANE) * x_isz + _round_up(o, _SUBLANE) * o_isz)
    rows = max(_LANE, budget // per_row)
    return (rows // _LANE) * _LANE


def _linear_kernel(x_ref, w_ref, b_ref, o_ref):
    # x_ref: (TM, D)   rows on sublanes, features on lanes (native dtype)
    # w_ref: (O, D)    resident across the grid (constant index map)
    # b_ref: (O, 1)    f32 bias column
    # o_ref: (O, TM)   lane-dense output (batch on the lane axis)
    x = x_ref[...]
    w = w_ref[...]
    # Contract the last dim of both operands (A @ B^T).  Any relayout lands on
    # the tiny (O, D) weight, never the big x tile, and the result is directly
    # in the lane-dense (O, TM) layout.  f32 accumulation on the MXU.
    z = lax.dot_general(
        w, x,
        dimension_numbers=(((1,), (1,)), ((), ())),
        preferred_element_type=jnp.float32,
    )
    o_ref[...] = (z + b_ref[...]).astype(o_ref.dtype)


def linear_net(x, weight, bias, *, block_rows=32768, vmem_limit_bytes=None):
    """Forward of LinearNet: y = x @ weight.T + bias.

    x:      (N, D) activations (any float dtype; DMA'd without upcasting)
    weight: (O, D)
    bias:   (O,)
    Returns (N, O) in promote_types(x.dtype, weight.dtype).
    """
    N, D = x.shape
    O = weight.shape[0]
    out_dtype = jnp.promote_types(x.dtype, weight.dtype)
    b_col = bias.reshape(O, 1).astype(jnp.float32)

    x_isz = jnp.dtype(x.dtype).itemsize
    w_isz = jnp.dtype(weight.dtype).itemsize
    o_isz = jnp.dtype(out_dtype).itemsize

    # --- tile selection ------------------------------------------------------
    cap_rows = _max_rows_for_budget(_VMEM_BUDGET_BYTES, D, O, x_isz, o_isz)
    req_rows = _round_up(max(int(block_rows), _LANE), _LANE)
    max_tile = min(req_rows, cap_rows)

    if N <= max_tile:
        # Single block covering the full arrays: no (8,128) divisibility
        # constraints, no padding, no per-step grid overhead.
        tm = N
        grid_n = 1
    else:
        # Multiple-of-128 tile (output lane tiling).  Cap near cdiv(N, 8) so
        # the grid has >= ~8 steps and ("parallel",) shards across v7x's 2 TCs.
        tm = min(max_tile, _round_up(pl.cdiv(N, 8), _LANE))
        grid_n = pl.cdiv(N, tm)
        if grid_n > 1 and grid_n % 2:
            # Prefer an even step count so the two TensorCores get equal work.
            tm_even = min(max_tile, _round_up(pl.cdiv(N, grid_n + 1), _LANE))
            tm = tm_even
            grid_n = pl.cdiv(N, tm)

    if vmem_limit_bytes is None:
        need = _tile_vmem_bytes(tm, D, O, x_isz, w_isz, o_isz)
        vmem_limit_bytes = max(need + (4 << 20), 32 << 20)

    cost = pl.CostEstimate(
        flops=2 * N * D * O,
        transcendentals=0,
        bytes_accessed=N * D * x_isz + O * D * w_isz + N * O * o_isz + O * 4,
    )

    out_t = pl.pallas_call(
        _linear_kernel,
        out_shape=jax.ShapeDtypeStruct((O, N), out_dtype),
        grid=(grid_n,),
        in_specs=[
            pl.BlockSpec((tm, D), lambda i: (i, 0)),   # x row tile (ragged last block)
            pl.BlockSpec((O, D), lambda i: (0, 0)),    # whole weight, resident
            pl.BlockSpec((O, 1), lambda i: (0, 0)),    # bias column, resident
        ],
        out_specs=pl.BlockSpec((O, tm), lambda i: (0, i)),  # lane-dense output
        compiler_params=pltpu.CompilerParams(
            dimension_semantics=("parallel",),
            vmem_limit_bytes=int(vmem_limit_bytes),
        ),
        cost_estimate=cost,
    )(x, weight, b_col)

    # (O, N) -> (N, O): pure layout plumbing in the XLA wrapper.
    return out_t.T


def init_linear_params(key, input_dim=18, output_dim=1):
    # Deterministic init mimicking nn.Linear's default U(-1/sqrt(in), 1/sqrt(in)).
    kw, kb = jax.random.split(key)
    bound = 1.0 / jnp.sqrt(jnp.float32(input_dim))
    weight = jax.random.uniform(
        kw, (output_dim, input_dim), jnp.float32, minval=-bound, maxval=bound
    )
    bias = jax.random.uniform(
        kb, (output_dim,), jnp.float32, minval=-bound, maxval=bound
    )
    return weight, bias


if __name__ == "__main__":
    key = jax.random.PRNGKey(0)
    k_x, k_x2, k_x3, k_params = jax.random.split(key, 4)

    input_dim, output_dim = 18, 1
    weight, bias = init_linear_params(k_params, input_dim, output_dim)

    # 1) Small batch: single full-array block path.
    x = jax.random.normal(k_x, (8, input_dim), dtype=jnp.float32)
    out = jax.block_until_ready(linear_net(x, weight, bias))
    ref = x @ weight.T + bias
    assert out.shape == (8, output_dim)
    assert jnp.allclose(out, ref, atol=1e-5, rtol=1e-5)

    # 2) Tiled path with a ragged last block (no jnp.pad, masked edge writes).
    x2 = jax.random.normal(k_x2, (600, input_dim), dtype=jnp.float32)
    out2 = jax.block_until_ready(linear_net(x2, weight, bias, block_rows=128))
    ref2 = x2 @ weight.T + bias
    assert out2.shape == (600, output_dim)
    assert jnp.allclose(out2, ref2, atol=1e-5, rtol=1e-5)

    # 3) Native bf16 activations/weights: no wrapper upcast, f32 accumulation.
    x3 = jax.random.normal(k_x3, (16, input_dim), dtype=jnp.float32).astype(jnp.bfloat16)
    w_bf = weight.astype(jnp.bfloat16)
    out3 = jax.block_until_ready(linear_net(x3, w_bf, bias))
    ref3 = x3.astype(jnp.float32) @ w_bf.astype(jnp.float32).T + bias
    assert out3.shape == (16, output_dim)
    assert jnp.allclose(out3.astype(jnp.float32), ref3, atol=2e-2, rtol=2e-2)

    print("KERNEL_OK")
</pallas_src>

<mosaic_0001>
module attributes {stable_mosaic.version = 11 : i64} {
  func.func @_linear_kernel(%arg0: i32, %arg1: memref<8x18xf32, #tpu.memory_space<vmem>>, %arg2: memref<1x18xf32, #tpu.memory_space<vmem>>, %arg3: memref<1x1xf32, #tpu.memory_space<vmem>>, %arg4: memref<1x8xf32, #tpu.memory_space<vmem>>) attributes {dimension_semantics = [#tpu.dimension_semantics<parallel>], iteration_bounds = array<i64: 1>, scalar_prefetch = 0 : i64, scratch_operands = 0 : i64, tpu.core_type = #tpu.core_type<tc>, window_params = [{transform_indices = @transform_0, window_bounds = array<i64: 8, 18>}, {pipeline_mode = #tpu.pipeline_mode<synchronous>, transform_indices = @transform_1, window_bounds = array<i64: 1, 18>}, {pipeline_mode = #tpu.pipeline_mode<synchronous>, transform_indices = @transform_2, window_bounds = array<i64: 1, 1>}, {transform_indices = @transform_3, window_bounds = array<i64: 1, 8>}]} {
    %c0 = arith.constant 0 : index
    %c0_0 = arith.constant 0 : index
    %0 = vector.load %arg1[%c0, %c0_0] : memref<8x18xf32, #tpu.memory_space<vmem>>, vector<8x18xf32>
    %c0_1 = arith.constant 0 : index
    %c0_2 = arith.constant 0 : index
    %1 = vector.load %arg2[%c0_1, %c0_2] : memref<1x18xf32, #tpu.memory_space<vmem>>, vector<1x18xf32>
    %cst = arith.constant dense<0.000000e+00> : vector<1x8xf32>
    %2 = tpu.matmul %1, %0, %cst {dimension_numbers = #tpu.dot_dimension_numbers<[1], [1], [0], [0], [0, 0, 1, 0], [], []>} : vector<1x18xf32>, vector<8x18xf32>, vector<1x8xf32> -> vector<1x8xf32>
    %c0_3 = arith.constant 0 : index
    %c0_4 = arith.constant 0 : index
    %3 = vector.load %arg3[%c0_3, %c0_4] : memref<1x1xf32, #tpu.memory_space<vmem>>, vector<1x1xf32>
    %4 = vector.broadcast %3 : vector<1x1xf32> to vector<1x8xf32>
    %5 = arith.addf %2, %4 : vector<1x8xf32>
    %c0_5 = arith.constant 0 : index
    %c0_6 = arith.constant 0 : index
    %6 = vector.load %arg4[%c0_5, %c0_6] : memref<1x8xf32, #tpu.memory_space<vmem>>, vector<1x8xf32>
    tpu.vector_store %arg4[%c0_5, %c0_6], %5 {strides = array<i32>} : memref<1x8xf32, #tpu.memory_space<vmem>>, vector<1x8xf32>,
    return
  }
  func.func @transform_0(%arg0: i32) -> (i32, i32) {
    %c0_i32 = arith.constant 0 : i32
    %c0_i32_0 = arith.constant 0 : i32
    return %arg0, %c0_i32 : i32, i32
  }
  func.func @transform_1(%arg0: i32) -> (i32, i32) {
    %c0_i32 = arith.constant 0 : i32
    %c0_i32_0 = arith.constant 0 : i32
    %c0_i32_1 = arith.constant 0 : i32
    return %c0_i32, %c0_i32_0 : i32, i32
  }
  func.func @transform_2(%arg0: i32) -> (i32, i32) {
    %c0_i32 = arith.constant 0 : i32
    %c0_i32_0 = arith.constant 0 : i32
    %c0_i32_1 = arith.constant 0 : i32
    return %c0_i32, %c0_i32_0 : i32, i32
  }
  func.func @transform_3(%arg0: i32) -> (i32, i32) {
    %c0_i32 = arith.constant 0 : i32
    %c0_i32_0 = arith.constant 0 : i32
    return %c0_i32, %arg0 : i32, i32
  }
}

</mosaic_0001>

<bundles_post_ra>
// kernel: tpu_custom_call.1
= control target key start
LH: loop header
LB: loop body
LE: loop exit
PB: predicated region body
PF: predicated region fallthrough
CT: control target
= control target key end

     0   :  { %s179_s0 = inlined_call_operand.hbm [shape: f32[8,18], index: 0, kind: input, shape index: {}]   ;;  %s180_s1 = inlined_call_operand.vmem [shape: f32[1,18], index: 1, kind: input, shape index: {}]   ;;  %s181_s2 = inlined_call_operand.<no memory space> [shape: f32[1,1], index: 2, kind: input, shape index: {}]   ;;  %s182_s3 = inlined_call_operand.hbm [shape: f32[1,8], index: 3, kind: output, shape index: {}]  }
   0x1   :  { %v8_v0 = vstv %s181_s2 }
   0x2   :  { %9 = vst [vmem:[#allocation2] sm:$0x1] %v8_v0 }
   0x3   :  { %10 = vsyncpa [#allocation4], 0 }
   0x4   :  { %11 = vsyncpa [#allocation5], 0  ;;  %s17_s16 = sshll.u32 %s179_s0, 4  ;;  %s144_s17 = smov [#allocation3]   ;;  %s18_s16 = int_to_ptr.hbm [resolvable:$true] %s17_s16 }
   0x5   :  { %s19_s18 = sshll.u32 %s144_s17, 4  ;;  %s20_s18 = int_to_ptr.vmem [resolvable:$true] %s19_s18 }
   0x6   :  { %22 = dma.hbm_to_vmem [thread:$0]  %s18_s16, 128, %s20_s18, [#allocation4]  }
   0x7   :  { %140 = dma.done.wait [#allocation4], 128  }
   0x8   :  { %141 = vsyncadd [#allocation4], 4294967168  ;;  %v145_v1 = vmov 0   ;;  %vm40_vm0 = vcmask 146432   ;;  %v31_v2 = vld [vmem:[#allocation3] sm:$0xff]  ;;  %s146_s0 = smov [#allocation6]  }
   0x9   :  { %91 = vset.pattern.permute.xlu0 %v145_v1  ;;  %v33_v3 = vld [vmem:[#allocation2] sm:$0x1]  ;;  %86 = vmatpush.xpose.msk.msra.mxu0 %vm40_vm0, %v31_v2  ;;  %s74_s20 = sshll.u32 %s146_s0, 4  ;;  %s76_s23 = sshll.u32 %s182_s3, 4  ;;  %vm67_vm1 = vcmask 57344   ;;  %s75_s20 = int_to_ptr.vmem [resolvable:$true] %s74_s20  ;;  %s77_s23 = int_to_ptr.hbm [resolvable:$true] %s76_s23 }
   0xa   :  { %v32_v4 = vld [vmem:[%s180_s1] sm:$0x1]  ;;  %36 = vperm.xlu0 %91, %v33_v3  }
   0xc   :  { %87 = vmatmul.msk.f32.vlgmr.msra.gmra.mxu0 %vm40_vm0, %v32_v4 }
  0x7c   :  { %v37_v5 = vpop.permute.xlu0 %36 }
  0x7d   :  { %v39_v6 = vperm.slane %v37_v5, 0 }
  0x89   :  { %v64_v7 = vpop.f32.mrf.mxu0 }
  0x8a   :  { %v65_v8 = vadd.f32 %v64_v7, %v39_v6 }
  0x8c   :  { %68 = vst.msk [vmem:[#allocation6] sm:$0x1] %vm67_vm1, %v65_v8 }
  0x8d   :  { %79 = dma.vmem_to_hbm [thread:$0]  %s75_s20, 16, %s77_s23, [#allocation5]  }
  0x8e   :  { %142 = dma.done.wait [#allocation5], 16  }
  0x8f   :  { %143 = vsyncadd [#allocation5], 4294967280 }
  0x90   :  { %84 = vsyncpa [#allocation4], 1 }
  0x91   :  { %85 = vsyncpa [#allocation5], 1 }

</bundles_post_ra>
